<compile_context>
chip_gen: v7x
topology: tpu7x:2x2x1
jax: 0.10.0
libtpu: 0.0.40
codegen_flags: <defaults>
</compile_context>

<pallas_src>
import jax
import jax.numpy as jnp
from jax import lax
from jax.experimental import pallas as pl
from jax.experimental.pallas import tpu as pltpu

# ---------------- config (small synthetic BERT) ----------------
VOCAB      = 64
HIDDEN     = 32
NUM_HEADS  = 4
HEAD_DIM   = HIDDEN // NUM_HEADS
FFN        = 4 * HIDDEN
NUM_LABELS = 3
MAX_SEQ    = 16
LN_EPS     = 1e-12
OUT_PAD    = 128          # lane-dense padded logits width
NUM_MODELS = 2            # BIO + polarity


def _layer_norm(x, gamma, beta):
    mu = jnp.mean(x, axis=-1, keepdims=True)
    var = jnp.mean((x - mu) ** 2, axis=-1, keepdims=True)
    return (x - mu) * lax.rsqrt(var + LN_EPS) * gamma + beta


# ---------------- Pallas kernel: encoder layer + token classifier ----------------
def _encoder_classifier_kernel(
    x_ref, mask_ref,
    wqkv_ref, bqkv_ref, wo_ref, w1_ref, b1_ref, w2_ref,
    wc_ref, bc_ref, smallb_ref,
    out_ref,
):
    # one grid step == one model (BIO or polarity); all B*S rows in one slab.
    x = x_ref[...]            # (BS, H)
    mask = mask_ref[...]      # (BS, BS) additive mask (block-diag batch + key padding)

    smallb = smallb_ref[...]                       # (6, H) packed small params
    bo, b2 = smallb[0:1, :], smallb[1:2, :]
    ln1_g, ln1_b = smallb[2:3, :], smallb[3:4, :]
    ln2_g, ln2_b = smallb[4:5, :], smallb[5:6, :]

    # ---- fused QKV projection: single (BS,H)x(H,3H) MXU pass ----
    qkv = jnp.dot(x, wqkv_ref[...], preferred_element_type=jnp.float32) + bqkv_ref[...]
    q = qkv[:, :HIDDEN]
    k = qkv[:, HIDDEN:2 * HIDDEN]
    v = qkv[:, 2 * HIDDEN:]

    wo = wo_ref[...]
    scale = 1.0 / (HEAD_DIM ** 0.5)
    attn = jnp.zeros(x.shape, jnp.float32)
    for h in range(NUM_HEADS):                     # static, fully unrolled
        sl = slice(h * HEAD_DIM, (h + 1) * HEAD_DIM)
        qh, kh, vh = q[:, sl], k[:, sl], v[:, sl]  # (BS, HD)
        # scores over all BS keys; mask makes it block-diagonal per sequence
        s = lax.dot_general(qh, kh, (((1,), (1,)), ((), ())),
                            preferred_element_type=jnp.float32) * scale + mask
        m = jnp.max(s, axis=-1, keepdims=True)
        e = jnp.exp(s - m)
        p = e * pl.reciprocal(jnp.sum(e, axis=-1, keepdims=True), approx=True)
        ctx = jnp.dot(p, vh, preferred_element_type=jnp.float32)          # (BS, HD)
        # fold the output projection per head -> no lane concatenate needed
        attn = attn + jnp.dot(ctx, wo[sl, :], preferred_element_type=jnp.float32)

    x1 = _layer_norm(x + attn + bo, ln1_g, ln1_b)

    # ---- feed-forward ----
    h1 = jnp.dot(x1, w1_ref[...], preferred_element_type=jnp.float32) + b1_ref[...]
    # TODO(synk): HF BertForTokenClassification default is exact (erf) GELU;
    # tanh-approx GELU kept here for guaranteed Mosaic lowering.
    h1 = jax.nn.gelu(h1, approximate=True)
    h2 = jnp.dot(h1, w2_ref[...], preferred_element_type=jnp.float32) + b2
    x2 = _layer_norm(x1 + h2, ln2_g, ln2_b)

    # ---- token classification head, pre-padded to OUT_PAD lanes (lane-dense store) ----
    out_ref[...] = jnp.dot(x2, wc_ref[...], preferred_element_type=jnp.float32) + bc_ref[...]


# ---------------- parameter packing (per model) ----------------
_PACKED_NAMES = ("wqkv", "bqkv", "wo", "w1", "b1", "w2", "wc", "bc", "smallb")


def _pack_params(p):
    wqkv = jnp.concatenate([p["wq"], p["wk"], p["wv"]], axis=1)          # (H, 3H)
    bqkv = jnp.concatenate([p["bq"], p["bk"], p["bv"]], axis=1)          # (1, 3H)
    wc = jnp.pad(p["wc"], ((0, 0), (0, OUT_PAD - NUM_LABELS)))           # (H, 128)
    bc = jnp.pad(p["bc"], ((0, 0), (0, OUT_PAD - NUM_LABELS)))           # (1, 128)
    smallb = jnp.concatenate(
        [p["bo"], p["b2"], p["ln1_g"], p["ln1_b"], p["ln2_g"], p["ln2_b"]], axis=0)  # (6, H)
    return {"wqkv": wqkv, "bqkv": bqkv, "wo": p["wo"], "w1": p["w1"],
            "b1": p["b1"], "w2": p["w2"], "wc": wc, "bc": bc, "smallb": smallb}


# ---------------- fused forward: both models in one pallas_call ----------------
def soft_share_forward(input_ids, attention_mask, params_bio, params_pol):
    """Mirrors SoftShareTransformer.forward: returns (output_BIO, output_polarity)."""
    B, S = input_ids.shape
    BS = B * S
    ids = input_ids.reshape(BS)
    pos_ids = jnp.tile(jnp.arange(S), B)

    # stack the two models' packed params along a leading "model" axis
    pk_bio, pk_pol = _pack_params(params_bio), _pack_params(params_pol)
    packed = {n: jnp.stack([pk_bio[n], pk_pol[n]], axis=0) for n in _PACKED_NAMES}

    word_emb = jnp.stack([params_bio["word_emb"], params_pol["word_emb"]], 0)  # (2,V,H)
    pos_emb  = jnp.stack([params_bio["pos_emb"],  params_pol["pos_emb"]], 0)   # (2,P,H)
    emb_g = jnp.stack([params_bio["emb_ln_g"], params_pol["emb_ln_g"]], 0)     # (2,1,H)
    emb_b = jnp.stack([params_bio["emb_ln_b"], params_pol["emb_ln_b"]], 0)

    # --- glue: embedding gather + embedding LayerNorm (per model) ---
    tok = word_emb[:, ids, :]                          # (2, BS, H)
    pos = pos_emb[:, pos_ids, :]                       # (2, BS, H)
    x_emb = _layer_norm(tok + pos, emb_g, emb_b).astype(jnp.float32)

    # additive attention mask: block-diagonal over batch elements + key padding
    batch_id = jnp.repeat(jnp.arange(B), S)            # (BS,)
    valid = (batch_id[:, None] == batch_id[None, :]) & \
            (attention_mask.reshape(BS)[None, :] > 0)
    mask_bias = jnp.where(valid, 0.0, -1e9).astype(jnp.float32)   # (BS, BS)

    weights = [packed[n] for n in _PACKED_NAMES]       # every packed weight is 3-D: (2, r, c)
    weight_specs = [
        pl.BlockSpec((None,) + tuple(w.shape[1:]), lambda m: (m, 0, 0)) for w in weights
    ]

    grid_spec = pltpu.PrefetchScalarGridSpec(
        num_scalar_prefetch=0,
        grid=(NUM_MODELS,),                            # one grid step per model
        in_specs=[
            pl.BlockSpec((None, BS, HIDDEN), lambda m: (m, 0, 0)),   # per-model embeddings
            pl.BlockSpec((BS, BS), lambda m: (0, 0)),                # shared mask
        ] + weight_specs,
        out_specs=pl.BlockSpec((None, BS, OUT_PAD), lambda m: (m, 0, 0)),
    )

    out_pad = pl.pallas_call(
        _encoder_classifier_kernel,
        out_shape=jax.ShapeDtypeStruct((NUM_MODELS, BS, OUT_PAD), jnp.float32),
        grid_spec=grid_spec,
        compiler_params=pltpu.CompilerParams(
            dimension_semantics=("parallel",)),        # both models can land on both TCs (v7x)
    )(x_emb, mask_bias, *weights)

    logits = out_pad[:, :, :NUM_LABELS].reshape(NUM_MODELS, B, S, NUM_LABELS)
    return logits[0], logits[1]


# ---------------- deterministic parameter init ----------------
def make_params(key):
    keys = iter(jax.random.split(key, 16))

    def nrm(shape, scale=0.02):
        return jax.random.normal(next(keys), shape, jnp.float32) * scale

    return {
        "word_emb": nrm((VOCAB, HIDDEN)),
        "pos_emb": nrm((MAX_SEQ, HIDDEN)),
        "emb_ln_g": jnp.ones((1, HIDDEN), jnp.float32),
        "emb_ln_b": jnp.zeros((1, HIDDEN), jnp.float32),
        "wq": nrm((HIDDEN, HIDDEN)), "bq": jnp.zeros((1, HIDDEN), jnp.float32),
        "wk": nrm((HIDDEN, HIDDEN)), "bk": jnp.zeros((1, HIDDEN), jnp.float32),
        "wv": nrm((HIDDEN, HIDDEN)), "bv": jnp.zeros((1, HIDDEN), jnp.float32),
        "wo": nrm((HIDDEN, HIDDEN)), "bo": jnp.zeros((1, HIDDEN), jnp.float32),
        "ln1_g": jnp.ones((1, HIDDEN), jnp.float32),
        "ln1_b": jnp.zeros((1, HIDDEN), jnp.float32),
        "w1": nrm((HIDDEN, FFN)), "b1": jnp.zeros((1, FFN), jnp.float32),
        "w2": nrm((FFN, HIDDEN)), "b2": jnp.zeros((1, HIDDEN), jnp.float32),
        "ln2_g": jnp.ones((1, HIDDEN), jnp.float32),
        "ln2_b": jnp.zeros((1, HIDDEN), jnp.float32),
        "wc": nrm((HIDDEN, NUM_LABELS)), "bc": jnp.zeros((1, NUM_LABELS), jnp.float32),
    }


# TODO(synk): tokenizer, pretrained-checkpoint loading, training loop
# (fit/backward/optimizers) and the soft_loss L2 regularizer are training-time
# machinery, not part of the forward pass, and are intentionally not ported.

if __name__ == "__main__":
    B, S = 2, 8

    key = jax.random.PRNGKey(0)
    k_ids, k_bio, k_pol = jax.random.split(key, 3)

    input_ids = jax.random.randint(k_ids, (B, S), 0, VOCAB, dtype=jnp.int32)
    attention_mask = jnp.ones((B, S), jnp.int32).at[1, S - 2:].set(0)  # pad last 2 of seq 1

    params_bio = make_params(k_bio)
    params_pol = make_params(k_pol)

    fwd = jax.jit(soft_share_forward)
    out_bio, out_pol = fwd(input_ids, attention_mask, params_bio, params_pol)
    jax.block_until_ready((out_bio, out_pol))

    assert out_bio.shape == (B, S, NUM_LABELS)
    assert out_pol.shape == (B, S, NUM_LABELS)
    assert bool(jnp.all(jnp.isfinite(out_bio))) and bool(jnp.all(jnp.isfinite(out_pol)))
    print("KERNEL_OK")
</pallas_src>

<mosaic_0001>
module attributes {stable_mosaic.version = 11 : i64} {
  func.func @_encoder_classifier_kernel(%arg0: i32, %arg1: memref<1x16x32xf32, #tpu.memory_space<vmem>>, %arg2: memref<16x16xf32, #tpu.memory_space<vmem>>, %arg3: memref<1x32x96xf32, #tpu.memory_space<vmem>>, %arg4: memref<1x1x96xf32, #tpu.memory_space<vmem>>, %arg5: memref<1x32x32xf32, #tpu.memory_space<vmem>>, %arg6: memref<1x32x128xf32, #tpu.memory_space<vmem>>, %arg7: memref<1x1x128xf32, #tpu.memory_space<vmem>>, %arg8: memref<1x128x32xf32, #tpu.memory_space<vmem>>, %arg9: memref<1x32x128xf32, #tpu.memory_space<vmem>>, %arg10: memref<1x1x128xf32, #tpu.memory_space<vmem>>, %arg11: memref<1x6x32xf32, #tpu.memory_space<vmem>>, %arg12: memref<1x16x128xf32, #tpu.memory_space<vmem>>) attributes {dimension_semantics = [#tpu.dimension_semantics<parallel>], iteration_bounds = array<i64: 2>, scalar_prefetch = 0 : i64, scratch_operands = 0 : i64, tpu.core_type = #tpu.core_type<tc>, window_params = [{transform_indices = @transform_0, window_bounds = array<i64: 1, 16, 32>}, {pipeline_mode = #tpu.pipeline_mode<synchronous>, transform_indices = @transform_1, window_bounds = array<i64: 16, 16>}, {transform_indices = @transform_2, window_bounds = array<i64: 1, 32, 96>}, {transform_indices = @transform_3, window_bounds = array<i64: 1, 1, 96>}, {transform_indices = @transform_4, window_bounds = array<i64: 1, 32, 32>}, {transform_indices = @transform_5, window_bounds = array<i64: 1, 32, 128>}, {transform_indices = @transform_6, window_bounds = array<i64: 1, 1, 128>}, {transform_indices = @transform_7, window_bounds = array<i64: 1, 128, 32>}, {transform_indices = @transform_8, window_bounds = array<i64: 1, 32, 128>}, {transform_indices = @transform_9, window_bounds = array<i64: 1, 1, 128>}, {transform_indices = @transform_10, window_bounds = array<i64: 1, 6, 32>}, {transform_indices = @transform_11, window_bounds = array<i64: 1, 16, 128>}]} {
    %c0 = arith.constant 0 : index
    %c0_0 = arith.constant 0 : index
    %c0_1 = arith.constant 0 : index
    %0 = vector.load %arg1[%c0, %c0_0, %c0_1] : memref<1x16x32xf32, #tpu.memory_space<vmem>>, vector<1x16x32xf32>
    %1 = vector.shape_cast %0 : vector<1x16x32xf32> to vector<16x32xf32>
    %c0_2 = arith.constant 0 : index
    %c0_3 = arith.constant 0 : index
    %2 = vector.load %arg2[%c0_2, %c0_3] : memref<16x16xf32, #tpu.memory_space<vmem>>, vector<16x16xf32>
    %c0_4 = arith.constant 0 : index
    %c0_5 = arith.constant 0 : index
    %c0_6 = arith.constant 0 : index
    %3 = vector.load %arg11[%c0_4, %c0_5, %c0_6] : memref<1x6x32xf32, #tpu.memory_space<vmem>>, vector<1x6x32xf32>
    %4 = vector.shape_cast %3 : vector<1x6x32xf32> to vector<6x32xf32>
    %5 = vector.extract_strided_slice %4 {offsets = [0, 0], sizes = [1, 32], strides = [1, 1]} : vector<6x32xf32> to vector<1x32xf32>
    %6 = vector.extract_strided_slice %4 {offsets = [1, 0], sizes = [1, 32], strides = [1, 1]} : vector<6x32xf32> to vector<1x32xf32>
    %7 = vector.extract_strided_slice %4 {offsets = [2, 0], sizes = [1, 32], strides = [1, 1]} : vector<6x32xf32> to vector<1x32xf32>
    %8 = vector.extract_strided_slice %4 {offsets = [3, 0], sizes = [1, 32], strides = [1, 1]} : vector<6x32xf32> to vector<1x32xf32>
    %9 = vector.extract_strided_slice %4 {offsets = [4, 0], sizes = [1, 32], strides = [1, 1]} : vector<6x32xf32> to vector<1x32xf32>
    %10 = vector.extract_strided_slice %4 {offsets = [5, 0], sizes = [1, 32], strides = [1, 1]} : vector<6x32xf32> to vector<1x32xf32>
    %c0_7 = arith.constant 0 : index
    %c0_8 = arith.constant 0 : index
    %c0_9 = arith.constant 0 : index
    %11 = vector.load %arg3[%c0_7, %c0_8, %c0_9] : memref<1x32x96xf32, #tpu.memory_space<vmem>>, vector<1x32x96xf32>
    %12 = vector.shape_cast %11 : vector<1x32x96xf32> to vector<32x96xf32>
    %cst = arith.constant dense<0.000000e+00> : vector<16x96xf32>
    %13 = tpu.matmul %1, %12, %cst {dimension_numbers = #tpu.dot_dimension_numbers<[1], [0], [0], [1], [0, 0, 1, 1], [], []>} : vector<16x32xf32>, vector<32x96xf32>, vector<16x96xf32> -> vector<16x96xf32>
    %c0_10 = arith.constant 0 : index
    %c0_11 = arith.constant 0 : index
    %c0_12 = arith.constant 0 : index
    %14 = vector.load %arg4[%c0_10, %c0_11, %c0_12] : memref<1x1x96xf32, #tpu.memory_space<vmem>>, vector<1x1x96xf32>
    %15 = vector.shape_cast %14 : vector<1x1x96xf32> to vector<1x96xf32>
    %16 = vector.broadcast %15 : vector<1x96xf32> to vector<16x96xf32>
    %17 = arith.addf %13, %16 : vector<16x96xf32>
    %18 = vector.extract_strided_slice %17 {offsets = [0, 0], sizes = [16, 32], strides = [1, 1]} : vector<16x96xf32> to vector<16x32xf32>
    %19 = vector.extract_strided_slice %17 {offsets = [0, 32], sizes = [16, 32], strides = [1, 1]} : vector<16x96xf32> to vector<16x32xf32>
    %20 = vector.extract_strided_slice %17 {offsets = [0, 64], sizes = [16, 32], strides = [1, 1]} : vector<16x96xf32> to vector<16x32xf32>
    %c0_13 = arith.constant 0 : index
    %c0_14 = arith.constant 0 : index
    %c0_15 = arith.constant 0 : index
    %21 = vector.load %arg5[%c0_13, %c0_14, %c0_15] : memref<1x32x32xf32, #tpu.memory_space<vmem>>, vector<1x32x32xf32>
    %22 = vector.shape_cast %21 : vector<1x32x32xf32> to vector<32x32xf32>
    %cst_16 = arith.constant 0.000000e+00 : f32
    %23 = vector.broadcast %cst_16 : f32 to vector<16x32xf32>
    %24 = vector.extract_strided_slice %18 {offsets = [0, 0], sizes = [16, 8], strides = [1, 1]} : vector<16x32xf32> to vector<16x8xf32>
    %25 = vector.extract_strided_slice %19 {offsets = [0, 0], sizes = [16, 8], strides = [1, 1]} : vector<16x32xf32> to vector<16x8xf32>
    %26 = vector.extract_strided_slice %20 {offsets = [0, 0], sizes = [16, 8], strides = [1, 1]} : vector<16x32xf32> to vector<16x8xf32>
    %cst_17 = arith.constant dense<0.000000e+00> : vector<16x16xf32>
    %27 = tpu.matmul %24, %25, %cst_17 {dimension_numbers = #tpu.dot_dimension_numbers<[1], [1], [0], [0], [0, 0, 1, 0], [], []>} : vector<16x8xf32>, vector<16x8xf32>, vector<16x16xf32> -> vector<16x16xf32>
    %cst_18 = arith.constant 0.353553385 : f32
    %28 = vector.broadcast %cst_18 : f32 to vector<16x16xf32>
    %29 = arith.mulf %27, %28 : vector<16x16xf32>
    %30 = arith.addf %29, %2 : vector<16x16xf32>
    %cst_19 = arith.constant dense<0xFF800000> : vector<16xf32>
    %31 = vector.multi_reduction <maximumf>, %30, %cst_19 [1] : vector<16x16xf32> to vector<16xf32>
    %32 = vector.shape_cast %31 : vector<16xf32> to vector<16x1xf32>
    %33 = vector.broadcast %32 : vector<16x1xf32> to vector<16x16xf32>
    %34 = arith.subf %30, %33 : vector<16x16xf32>
    %35 = math.exp %34 : vector<16x16xf32>
    %cst_20 = arith.constant dense<0.000000e+00> : vector<16xf32>
    %36 = vector.multi_reduction <add>, %35, %cst_20 [1] : vector<16x16xf32> to vector<16xf32>
    %37 = vector.shape_cast %36 : vector<16xf32> to vector<16x1xf32>
    %38 = tpu.reciprocal %37 {approx = true} : vector<16x1xf32> -> vector<16x1xf32>
    %39 = vector.broadcast %38 : vector<16x1xf32> to vector<16x16xf32>
    %40 = arith.mulf %35, %39 : vector<16x16xf32>
    %cst_21 = arith.constant dense<0.000000e+00> : vector<16x8xf32>
    %41 = tpu.matmul %40, %26, %cst_21 {dimension_numbers = #tpu.dot_dimension_numbers<[1], [0], [0], [1], [0, 0, 1, 1], [], []>} : vector<16x16xf32>, vector<16x8xf32>, vector<16x8xf32> -> vector<16x8xf32>
    %42 = vector.extract_strided_slice %22 {offsets = [0, 0], sizes = [8, 32], strides = [1, 1]} : vector<32x32xf32> to vector<8x32xf32>
    %cst_22 = arith.constant dense<0.000000e+00> : vector<16x32xf32>
    %43 = tpu.matmul %41, %42, %cst_22 {dimension_numbers = #tpu.dot_dimension_numbers<[1], [0], [0], [1], [0, 0, 1, 1], [], []>} : vector<16x8xf32>, vector<8x32xf32>, vector<16x32xf32> -> vector<16x32xf32>
    %44 = arith.addf %23, %43 : vector<16x32xf32>
    %45 = vector.extract_strided_slice %18 {offsets = [0, 8], sizes = [16, 8], strides = [1, 1]} : vector<16x32xf32> to vector<16x8xf32>
    %46 = vector.extract_strided_slice %19 {offsets = [0, 8], sizes = [16, 8], strides = [1, 1]} : vector<16x32xf32> to vector<16x8xf32>
    %47 = vector.extract_strided_slice %20 {offsets = [0, 8], sizes = [16, 8], strides = [1, 1]} : vector<16x32xf32> to vector<16x8xf32>
    %cst_23 = arith.constant dense<0.000000e+00> : vector<16x16xf32>
    %48 = tpu.matmul %45, %46, %cst_23 {dimension_numbers = #tpu.dot_dimension_numbers<[1], [1], [0], [0], [0, 0, 1, 0], [], []>} : vector<16x8xf32>, vector<16x8xf32>, vector<16x16xf32> -> vector<16x16xf32>
    %cst_24 = arith.constant 0.353553385 : f32
    %49 = vector.broadcast %cst_24 : f32 to vector<16x16xf32>
    %50 = arith.mulf %48, %49 : vector<16x16xf32>
    %51 = arith.addf %50, %2 : vector<16x16xf32>
    %cst_25 = arith.constant dense<0xFF800000> : vector<16xf32>
    %52 = vector.multi_reduction <maximumf>, %51, %cst_25 [1] : vector<16x16xf32> to vector<16xf32>
    %53 = vector.shape_cast %52 : vector<16xf32> to vector<16x1xf32>
    %54 = vector.broadcast %53 : vector<16x1xf32> to vector<16x16xf32>
    %55 = arith.subf %51, %54 : vector<16x16xf32>
    %56 = math.exp %55 : vector<16x16xf32>
    %cst_26 = arith.constant dense<0.000000e+00> : vector<16xf32>
    %57 = vector.multi_reduction <add>, %56, %cst_26 [1] : vector<16x16xf32> to vector<16xf32>
    %58 = vector.shape_cast %57 : vector<16xf32> to vector<16x1xf32>
    %59 = tpu.reciprocal %58 {approx = true} : vector<16x1xf32> -> vector<16x1xf32>
    %60 = vector.broadcast %59 : vector<16x1xf32> to vector<16x16xf32>
    %61 = arith.mulf %56, %60 : vector<16x16xf32>
    %cst_27 = arith.constant dense<0.000000e+00> : vector<16x8xf32>
    %62 = tpu.matmul %61, %47, %cst_27 {dimension_numbers = #tpu.dot_dimension_numbers<[1], [0], [0], [1], [0, 0, 1, 1], [], []>} : vector<16x16xf32>, vector<16x8xf32>, vector<16x8xf32> -> vector<16x8xf32>
    %63 = vector.extract_strided_slice %22 {offsets = [8, 0], sizes = [8, 32], strides = [1, 1]} : vector<32x32xf32> to vector<8x32xf32>
    %cst_28 = arith.constant dense<0.000000e+00> : vector<16x32xf32>
    %64 = tpu.matmul %62, %63, %cst_28 {dimension_numbers = #tpu.dot_dimension_numbers<[1], [0], [0], [1], [0, 0, 1, 1], [], []>} : vector<16x8xf32>, vector<8x32xf32>, vector<16x32xf32> -> vector<16x32xf32>
    %65 = arith.addf %44, %64 : vector<16x32xf32>
    %66 = vector.extract_strided_slice %18 {offsets = [0, 16], sizes = [16, 8], strides = [1, 1]} : vector<16x32xf32> to vector<16x8xf32>
    %67 = vector.extract_strided_slice %19 {offsets = [0, 16], sizes = [16, 8], strides = [1, 1]} : vector<16x32xf32> to vector<16x8xf32>
    %68 = vector.extract_strided_slice %20 {offsets = [0, 16], sizes = [16, 8], strides = [1, 1]} : vector<16x32xf32> to vector<16x8xf32>
    %cst_29 = arith.constant dense<0.000000e+00> : vector<16x16xf32>
    %69 = tpu.matmul %66, %67, %cst_29 {dimension_numbers = #tpu.dot_dimension_numbers<[1], [1], [0], [0], [0, 0, 1, 0], [], []>} : vector<16x8xf32>, vector<16x8xf32>, vector<16x16xf32> -> vector<16x16xf32>
    %cst_30 = arith.constant 0.353553385 : f32
    %70 = vector.broadcast %cst_30 : f32 to vector<16x16xf32>
    %71 = arith.mulf %69, %70 : vector<16x16xf32>
    %72 = arith.addf %71, %2 : vector<16x16xf32>
    %cst_31 = arith.constant dense<0xFF800000> : vector<16xf32>
    %73 = vector.multi_reduction <maximumf>, %72, %cst_31 [1] : vector<16x16xf32> to vector<16xf32>
    %74 = vector.shape_cast %73 : vector<16xf32> to vector<16x1xf32>
    %75 = vector.broadcast %74 : vector<16x1xf32> to vector<16x16xf32>
    %76 = arith.subf %72, %75 : vector<16x16xf32>
    %77 = math.exp %76 : vector<16x16xf32>
    %cst_32 = arith.constant dense<0.000000e+00> : vector<16xf32>
    %78 = vector.multi_reduction <add>, %77, %cst_32 [1] : vector<16x16xf32> to vector<16xf32>
    %79 = vector.shape_cast %78 : vector<16xf32> to vector<16x1xf32>
    %80 = tpu.reciprocal %79 {approx = true} : vector<16x1xf32> -> vector<16x1xf32>
    %81 = vector.broadcast %80 : vector<16x1xf32> to vector<16x16xf32>
    %82 = arith.mulf %77, %81 : vector<16x16xf32>
    %cst_33 = arith.constant dense<0.000000e+00> : vector<16x8xf32>
    %83 = tpu.matmul %82, %68, %cst_33 {dimension_numbers = #tpu.dot_dimension_numbers<[1], [0], [0], [1], [0, 0, 1, 1], [], []>} : vector<16x16xf32>, vector<16x8xf32>, vector<16x8xf32> -> vector<16x8xf32>
    %84 = vector.extract_strided_slice %22 {offsets = [16, 0], sizes = [8, 32], strides = [1, 1]} : vector<32x32xf32> to vector<8x32xf32>
    %cst_34 = arith.constant dense<0.000000e+00> : vector<16x32xf32>
    %85 = tpu.matmul %83, %84, %cst_34 {dimension_numbers = #tpu.dot_dimension_numbers<[1], [0], [0], [1], [0, 0, 1, 1], [], []>} : vector<16x8xf32>, vector<8x32xf32>, vector<16x32xf32> -> vector<16x32xf32>
    %86 = arith.addf %65, %85 : vector<16x32xf32>
    %87 = vector.extract_strided_slice %18 {offsets = [0, 24], sizes = [16, 8], strides = [1, 1]} : vector<16x32xf32> to vector<16x8xf32>
    %88 = vector.extract_strided_slice %19 {offsets = [0, 24], sizes = [16, 8], strides = [1, 1]} : vector<16x32xf32> to vector<16x8xf32>
    %89 = vector.extract_strided_slice %20 {offsets = [0, 24], sizes = [16, 8], strides = [1, 1]} : vector<16x32xf32> to vector<16x8xf32>
    %cst_35 = arith.constant dense<0.000000e+00> : vector<16x16xf32>
    %90 = tpu.matmul %87, %88, %cst_35 {dimension_numbers = #tpu.dot_dimension_numbers<[1], [1], [0], [0], [0, 0, 1, 0], [], []>} : vector<16x8xf32>, vector<16x8xf32>, vector<16x16xf32> -> vector<16x16xf32>
    %cst_36 = arith.constant 0.353553385 : f32
    %91 = vector.broadcast %cst_36 : f32 to vector<16x16xf32>
    %92 = arith.mulf %90, %91 : vector<16x16xf32>
    %93 = arith.addf %92, %2 : vector<16x16xf32>
    %cst_37 = arith.constant dense<0xFF800000> : vector<16xf32>
    %94 = vector.multi_reduction <maximumf>, %93, %cst_37 [1] : vector<16x16xf32> to vector<16xf32>
    %95 = vector.shape_cast %94 : vector<16xf32> to vector<16x1xf32>
    %96 = vector.broadcast %95 : vector<16x1xf32> to vector<16x16xf32>
    %97 = arith.subf %93, %96 : vector<16x16xf32>
    %98 = math.exp %97 : vector<16x16xf32>
    %cst_38 = arith.constant dense<0.000000e+00> : vector<16xf32>
    %99 = vector.multi_reduction <add>, %98, %cst_38 [1] : vector<16x16xf32> to vector<16xf32>
    %100 = vector.shape_cast %99 : vector<16xf32> to vector<16x1xf32>
    %101 = tpu.reciprocal %100 {approx = true} : vector<16x1xf32> -> vector<16x1xf32>
    %102 = vector.broadcast %101 : vector<16x1xf32> to vector<16x16xf32>
    %103 = arith.mulf %98, %102 : vector<16x16xf32>
    %cst_39 = arith.constant dense<0.000000e+00> : vector<16x8xf32>
    %104 = tpu.matmul %103, %89, %cst_39 {dimension_numbers = #tpu.dot_dimension_numbers<[1], [0], [0], [1], [0, 0, 1, 1], [], []>} : vector<16x16xf32>, vector<16x8xf32>, vector<16x8xf32> -> vector<16x8xf32>
    %105 = vector.extract_strided_slice %22 {offsets = [24, 0], sizes = [8, 32], strides = [1, 1]} : vector<32x32xf32> to vector<8x32xf32>
    %cst_40 = arith.constant dense<0.000000e+00> : vector<16x32xf32>
    %106 = tpu.matmul %104, %105, %cst_40 {dimension_numbers = #tpu.dot_dimension_numbers<[1], [0], [0], [1], [0, 0, 1, 1], [], []>} : vector<16x8xf32>, vector<8x32xf32>, vector<16x32xf32> -> vector<16x32xf32>
    %107 = arith.addf %86, %106 : vector<16x32xf32>
    %108 = arith.addf %1, %107 : vector<16x32xf32>
    %109 = vector.broadcast %5 : vector<1x32xf32> to vector<16x32xf32>
    %110 = arith.addf %108, %109 : vector<16x32xf32>
    %cst_41 = arith.constant dense<0.000000e+00> : vector<16xf32>
    %111 = vector.multi_reduction <add>, %110, %cst_41 [1] : vector<16x32xf32> to vector<16xf32>
    %112 = vector.shape_cast %111 : vector<16xf32> to vector<16x1xf32>
    %cst_42 = arith.constant 3.200000e+01 : f32
    %113 = vector.broadcast %cst_42 : f32 to vector<16x1xf32>
    %114 = arith.divf %112, %113 : vector<16x1xf32>
    %115 = vector.broadcast %114 : vector<16x1xf32> to vector<16x32xf32>
    %116 = arith.subf %110, %115 : vector<16x32xf32>
    %117 = arith.mulf %116, %116 : vector<16x32xf32>
    %cst_43 = arith.constant dense<0.000000e+00> : vector<16xf32>
    %118 = vector.multi_reduction <add>, %117, %cst_43 [1] : vector<16x32xf32> to vector<16xf32>
    %119 = vector.shape_cast %118 : vector<16xf32> to vector<16x1xf32>
    %cst_44 = arith.constant 3.200000e+01 : f32
    %120 = vector.broadcast %cst_44 : f32 to vector<16x1xf32>
    %121 = arith.divf %119, %120 : vector<16x1xf32>
    %122 = vector.broadcast %114 : vector<16x1xf32> to vector<16x32xf32>
    %123 = arith.subf %110, %122 : vector<16x32xf32>
    %cst_45 = arith.constant 9.99999996E-13 : f32
    %124 = vector.broadcast %cst_45 : f32 to vector<16x1xf32>
    %125 = arith.addf %121, %124 : vector<16x1xf32>
    %126 = math.rsqrt %125 : vector<16x1xf32>
    %127 = vector.broadcast %126 : vector<16x1xf32> to vector<16x32xf32>
    %128 = arith.mulf %123, %127 : vector<16x32xf32>
    %129 = vector.broadcast %7 : vector<1x32xf32> to vector<16x32xf32>
    %130 = arith.mulf %128, %129 : vector<16x32xf32>
    %131 = vector.broadcast %8 : vector<1x32xf32> to vector<16x32xf32>
    %132 = arith.addf %130, %131 : vector<16x32xf32>
    %c0_46 = arith.constant 0 : index
    %c0_47 = arith.constant 0 : index
    %c0_48 = arith.constant 0 : index
    %133 = vector.load %arg6[%c0_46, %c0_47, %c0_48] : memref<1x32x128xf32, #tpu.memory_space<vmem>>, vector<1x32x128xf32>
    %134 = vector.shape_cast %133 : vector<1x32x128xf32> to vector<32x128xf32>
    %cst_49 = arith.constant dense<0.000000e+00> : vector<16x128xf32>
    %135 = tpu.matmul %132, %134, %cst_49 {dimension_numbers = #tpu.dot_dimension_numbers<[1], [0], [0], [1], [0, 0, 1, 1], [], []>} : vector<16x32xf32>, vector<32x128xf32>, vector<16x128xf32> -> vector<16x128xf32>
    %c0_50 = arith.constant 0 : index
    %c0_51 = arith.constant 0 : index
    %c0_52 = arith.constant 0 : index
    %136 = vector.load %arg7[%c0_50, %c0_51, %c0_52] : memref<1x1x128xf32, #tpu.memory_space<vmem>>, vector<1x1x128xf32>
    %137 = vector.shape_cast %136 : vector<1x1x128xf32> to vector<1x128xf32>
    %138 = vector.broadcast %137 : vector<1x128xf32> to vector<16x128xf32>
    %139 = arith.addf %135, %138 : vector<16x128xf32>
    %140 = arith.mulf %139, %139 : vector<16x128xf32>
    %141 = arith.mulf %139, %140 : vector<16x128xf32>
    %cst_53 = arith.constant 4.471500e-02 : f32
    %142 = vector.broadcast %cst_53 : f32 to vector<16x128xf32>
    %143 = arith.mulf %142, %141 : vector<16x128xf32>
    %144 = arith.addf %139, %143 : vector<16x128xf32>
    %cst_54 = arith.constant 0.797884583 : f32
    %145 = vector.broadcast %cst_54 : f32 to vector<16x128xf32>
    %146 = arith.mulf %145, %144 : vector<16x128xf32>
    %147 = math.tanh %146 : vector<16x128xf32>
    %cst_55 = arith.constant 1.000000e+00 : f32
    %148 = vector.broadcast %cst_55 : f32 to vector<16x128xf32>
    %149 = arith.addf %148, %147 : vector<16x128xf32>
    %cst_56 = arith.constant 5.000000e-01 : f32
    %150 = vector.broadcast %cst_56 : f32 to vector<16x128xf32>
    %151 = arith.mulf %150, %149 : vector<16x128xf32>
    %152 = arith.mulf %139, %151 : vector<16x128xf32>
    %c0_57 = arith.constant 0 : index
    %c0_58 = arith.constant 0 : index
    %c0_59 = arith.constant 0 : index
    %153 = vector.load %arg8[%c0_57, %c0_58, %c0_59] : memref<1x128x32xf32, #tpu.memory_space<vmem>>, vector<1x128x32xf32>
    %154 = vector.shape_cast %153 : vector<1x128x32xf32> to vector<128x32xf32>
    %cst_60 = arith.constant dense<0.000000e+00> : vector<16x32xf32>
    %155 = tpu.matmul %152, %154, %cst_60 {dimension_numbers = #tpu.dot_dimension_numbers<[1], [0], [0], [1], [0, 0, 1, 1], [], []>} : vector<16x128xf32>, vector<128x32xf32>, vector<16x32xf32> -> vector<16x32xf32>
    %156 = vector.broadcast %6 : vector<1x32xf32> to vector<16x32xf32>
    %157 = arith.addf %155, %156 : vector<16x32xf32>
    %158 = arith.addf %132, %157 : vector<16x32xf32>
    %cst_61 = arith.constant dense<0.000000e+00> : vector<16xf32>
    %159 = vector.multi_reduction <add>, %158, %cst_61 [1] : vector<16x32xf32> to vector<16xf32>
    %160 = vector.shape_cast %159 : vector<16xf32> to vector<16x1xf32>
    %cst_62 = arith.constant 3.200000e+01 : f32
    %161 = vector.broadcast %cst_62 : f32 to vector<16x1xf32>
    %162 = arith.divf %160, %161 : vector<16x1xf32>
    %163 = vector.broadcast %162 : vector<16x1xf32> to vector<16x32xf32>
    %164 = arith.subf %158, %163 : vector<16x32xf32>
    %165 = arith.mulf %164, %164 : vector<16x32xf32>
    %cst_63 = arith.constant dense<0.000000e+00> : vector<16xf32>
    %166 = vector.multi_reduction <add>, %165, %cst_63 [1] : vector<16x32xf32> to vector<16xf32>
    %167 = vector.shape_cast %166 : vector<16xf32> to vector<16x1xf32>
    %cst_64 = arith.constant 3.200000e+01 : f32
    %168 = vector.broadcast %cst_64 : f32 to vector<16x1xf32>
    %169 = arith.divf %167, %168 : vector<16x1xf32>
    %170 = vector.broadcast %162 : vector<16x1xf32> to vector<16x32xf32>
    %171 = arith.subf %158, %170 : vector<16x32xf32>
    %cst_65 = arith.constant 9.99999996E-13 : f32
    %172 = vector.broadcast %cst_65 : f32 to vector<16x1xf32>
    %173 = arith.addf %169, %172 : vector<16x1xf32>
    %174 = math.rsqrt %173 : vector<16x1xf32>
    %175 = vector.broadcast %174 : vector<16x1xf32> to vector<16x32xf32>
    %176 = arith.mulf %171, %175 : vector<16x32xf32>
    %177 = vector.broadcast %9 : vector<1x32xf32> to vector<16x32xf32>
    %178 = arith.mulf %176, %177 : vector<16x32xf32>
    %179 = vector.broadcast %10 : vector<1x32xf32> to vector<16x32xf32>
    %180 = arith.addf %178, %179 : vector<16x32xf32>
    %c0_66 = arith.constant 0 : index
    %c0_67 = arith.constant 0 : index
    %c0_68 = arith.constant 0 : index
    %181 = vector.load %arg9[%c0_66, %c0_67, %c0_68] : memref<1x32x128xf32, #tpu.memory_space<vmem>>, vector<1x32x128xf32>
    %182 = vector.shape_cast %181 : vector<1x32x128xf32> to vector<32x128xf32>
    %cst_69 = arith.constant dense<0.000000e+00> : vector<16x128xf32>
    %183 = tpu.matmul %180, %182, %cst_69 {dimension_numbers = #tpu.dot_dimension_numbers<[1], [0], [0], [1], [0, 0, 1, 1], [], []>} : vector<16x32xf32>, vector<32x128xf32>, vector<16x128xf32> -> vector<16x128xf32>
    %c0_70 = arith.constant 0 : index
    %c0_71 = arith.constant 0 : index
    %c0_72 = arith.constant 0 : index
    %184 = vector.load %arg10[%c0_70, %c0_71, %c0_72] : memref<1x1x128xf32, #tpu.memory_space<vmem>>, vector<1x1x128xf32>
    %185 = vector.shape_cast %184 : vector<1x1x128xf32> to vector<1x128xf32>
    %186 = vector.broadcast %185 : vector<1x128xf32> to vector<16x128xf32>
    %187 = arith.addf %183, %186 : vector<16x128xf32>
    %c0_73 = arith.constant 0 : index
    %c0_74 = arith.constant 0 : index
    %c0_75 = arith.constant 0 : index
    %188 = vector.load %arg12[%c0_73, %c0_74, %c0_75] : memref<1x16x128xf32, #tpu.memory_space<vmem>>, vector<1x16x128xf32>
    %189 = vector.shape_cast %188 : vector<1x16x128xf32> to vector<16x128xf32>
    %190 = vector.shape_cast %187 : vector<16x128xf32> to vector<1x16x128xf32>
    tpu.vector_store %arg12[%c0_73, %c0_74, %c0_75], %190 {strides = array<i32>} : memref<1x16x128xf32, #tpu.memory_space<vmem>>, vector<1x16x128xf32>,
    return
  }
  func.func @transform_0(%arg0: i32) -> (i32, i32, i32) {
    %c0_i32 = arith.constant 0 : i32
    %c0_i32_0 = arith.constant 0 : i32
    %c0_i32_1 = arith.constant 0 : i32
    return %arg0, %c0_i32, %c0_i32_0 : i32, i32, i32
  }
  func.func @transform_1(%arg0: i32) -> (i32, i32) {
    %c0_i32 = arith.constant 0 : i32
    %c0_i32_0 = arith.constant 0 : i32
    %c0_i32_1 = arith.constant 0 : i32
    return %c0_i32, %c0_i32_0 : i32, i32
  }
  func.func @transform_2(%arg0: i32) -> (i32, i32, i32) {
    %c0_i32 = arith.constant 0 : i32
    %c0_i32_0 = arith.constant 0 : i32
    %c0_i32_1 = arith.constant 0 : i32
    return %arg0, %c0_i32, %c0_i32_0 : i32, i32, i32
  }
  func.func @transform_3(%arg0: i32) -> (i32, i32, i32) {
    %c0_i32 = arith.constant 0 : i32
    %c0_i32_0 = arith.constant 0 : i32
    %c0_i32_1 = arith.constant 0 : i32
    return %arg0, %c0_i32, %c0_i32_0 : i32, i32, i32
  }
  func.func @transform_4(%arg0: i32) -> (i32, i32, i32) {
    %c0_i32 = arith.constant 0 : i32
    %c0_i32_0 = arith.constant 0 : i32
    %c0_i32_1 = arith.constant 0 : i32
    return %arg0, %c0_i32, %c0_i32_0 : i32, i32, i32
  }
  func.func @transform_5(%arg0: i32) -> (i32, i32, i32) {
    %c0_i32 = arith.constant 0 : i32
    %c0_i32_0 = arith.constant 0 : i32
    %c0_i32_1 = arith.constant 0 : i32
    return %arg0, %c0_i32, %c0_i32_0 : i32, i32, i32
  }
  func.func @transform_6(%arg0: i32) -> (i32, i32, i32) {
    %c0_i32 = arith.constant 0 : i32
    %c0_i32_0 = arith.constant 0 : i32
    %c0_i32_1 = arith.constant 0 : i32
    return %arg0, %c0_i32, %c0_i32_0 : i32, i32, i32
  }
  func.func @transform_7(%arg0: i32) -> (i32, i32, i32) {
    %c0_i32 = arith.constant 0 : i32
    %c0_i32_0 = arith.constant 0 : i32
    %c0_i32_1 = arith.constant 0 : i32
    return %arg0, %c0_i32, %c0_i32_0 : i32, i32, i32
  }
  func.func @transform_8(%arg0: i32) -> (i32, i32, i32) {
    %c0_i32 = arith.constant 0 : i32
    %c0_i32_0 = arith.constant 0 : i32
    %c0_i32_1 = arith.constant 0 : i32
    return %arg0, %c0_i32, %c0_i32_0 : i32, i32, i32
  }
  func.func @transform_9(%arg0: i32) -> (i32, i32, i32) {
    %c0_i32 = arith.constant 0 : i32
    %c0_i32_0 = arith.constant 0 : i32
    %c0_i32_1 = arith.constant 0 : i32
    return %arg0, %c0_i32, %c0_i32_0 : i32, i32, i32
  }
  func.func @transform_10(%arg0: i32) -> (i32, i32, i32) {
    %c0_i32 = arith.constant 0 : i32
    %c0_i32_0 = arith.constant 0 : i32
    %c0_i32_1 = arith.constant 0 : i32
    return %arg0, %c0_i32, %c0_i32_0 : i32, i32, i32
  }
  func.func @transform_11(%arg0: i32) -> (i32, i32, i32) {
    %c0_i32 = arith.constant 0 : i32
    %c0_i32_0 = arith.constant 0 : i32
    %c0_i32_1 = arith.constant 0 : i32
    return %arg0, %c0_i32, %c0_i32_0 : i32, i32, i32
  }
}

</mosaic_0001>

<bundles_post_ra>
// kernel: eq.8
= control target key start
LH: loop header
LB: loop body
LE: loop exit
PB: predicated region body
PF: predicated region fallthrough
CT: control target
= control target key end

     0   :  { %vm7_vm0 = vcmask 64512   ;;  %vm13_vm1 = vcmask 130112   ;;  %s39_s0 = inlined_call_operand.vmem [shape: s32[2,8], index: 0, kind: input, shape index: {}]   ;;  %s40_s1 = inlined_call_operand.vmem [shape: s32[16], index: 1, kind: output, shape index: {}]  }
   0x1   :  { %v4_v0 = vld [vmem:[%s39_s0] sm:$0x3]  ;;  %s22_s0 = smov 8  }
   0x2   :  { %5 = vst [vmem:[#allocation1] sm:$0x3] %v4_v0 }
   0x9   :  { %v10_v1 = vld [vmem:[#allocation1 + $0x1] sm:$0x1]   ;;  %v6_v2 = vld [vmem:[#allocation1] sm:$0x1]  }
   0xa   :  { %11 = vrot.lane.b32.xlu0 %v10_v1, %s22_s0  ;;  %8 = vst.msk [vmem:[#allocation0] sm:$0x1] %vm7_vm0, %v6_v2  }
  0x7c   :  { %v12_v3 = vpop.permute.xlu0 %11  }
  0x7d   :  { %14 = vst.msk [vmem:[#allocation0] sm:$0x1] %vm13_vm1, %v12_v3  }
  0x84   :  { %v18_v4 = vld [vmem:[#allocation0] sm:$0x1] }
  0x85   :  { %20 = vst [vmem:[%s40_s1] sm:$0x1] %v18_v4 }

// kernel: soft_share_forward.1
= control target key start
LH: loop header
LB: loop body
LE: loop exit
PB: predicated region body
PF: predicated region fallthrough
CT: control target
= control target key end

     0   :  { %s2910_s17 = smov 0   ;;  %s3153_s0 = inlined_call_operand.vmem [shape: f32[2,16,32], index: 0, kind: input, shape index: {}]   ;;  %s3154_s1 = inlined_call_operand.vmem [shape: f32[16,16], index: 1, kind: input, shape index: {}]   ;;  %s3155_s2 = inlined_call_operand.vmem [shape: f32[2,32,96], index: 2, kind: input, shape index: {}]   ;;  %s3156_s3 = inlined_call_operand.vmem [shape: f32[2,1,96], index: 3, kind: input, shape index: {}]   ;;  %s3157_s4 = inlined_call_operand.vmem [shape: f32[2,32,32], index: 4, kind: input, shape index: {}]   ;;  %s3158_s5 = inlined_call_operand.vmem [shape: f32[2,32,128], index: 5, kind: input, shape index: {}]   ;;  %s3159_s6 = inlined_call_operand.vmem [shape: f32[2,1,128], index: 6, kind: input, shape index: {}]   ;;  %s3160_s7 = inlined_call_operand.vmem [shape: f32[2,128,32], index: 7, kind: input, shape index: {}]   ;;  %s3161_s8 = inlined_call_operand.vmem [shape: f32[2,32,128], index: 8, kind: input, shape index: {}]   ;;  %s3162_s9 = inlined_call_operand.vmem [shape: f32[2,1,128], index: 9, kind: input, shape index: {}]   ;;  %s3163_s10 = inlined_call_operand.vmem [shape: f32[2,6,32], index: 10, kind: input, shape index: {}]   ;;  %s3164_s11 = inlined_call_operand.vmem [shape: f32[2,16,128], index: 11, kind: output, shape index: {}]  }
   0x1 LB: > { %s2332_s18 = sadd.s32 4294967295, %s2837_s17   ;;  %p2336_p0 = scmp.ge.s32.totalorder %s2837_s17, 1  ;;  %s2837_s17 = sphi %s2910_s17, %s21_s17  }
   0x2   : > { %p420_p1 = scmp.lt.s32.totalorder %s2837_s17, 3 }
   0x4   : > { %p421_p2 = pnand %p2336_p0, %p420_p1 }
   0x5   : > { %p498_p3 = scmp.lt.s32.totalorder (!%p421_p2), %s2332_s18, 1  ;;  %vm562_vm0 = vcmask (!%p421_p2), 261120   ;;  %vm654_vm1 = vcmask (!%p421_p2), 64512   ;;  %s2839_s30 = smov (!%p421_p2), 96   ;;  %v2971_v20 = vld [vmem:[%s3154_s1 + $0x8] sm:$0xff] (!%p421_p2)  ;;  %v2976_v23 = vld [vmem:[%s3154_s1] sm:$0xff] (!%p421_p2) }
   0x6   : > { %424 = sbr.rel (%p421_p2) target bundleno = 3723 (0xe8b), region = 64  ;;  %vm2958_vm2 = vmpackc.low (!%p421_p2), %vm654_vm1, %vm654_vm1  ;;  %vm742_vm3 = vcmask (!%p421_p2), 130048   ;;  %s2840_s16 = smov (!%p421_p2), 64  }
   0x7   : > { %s2841_s20 = smov (!%p421_p2), 88   ;;  %s2842_s21 = smov (!%p421_p2), 120  }
   0x8   : > { %s2844_s24 = smov (!%p421_p2), 112   ;;  %s2845_s25 = smov (!%p421_p2), 56  }
   0x9   : > { %s2847_s27 = smov (!%p421_p2), 104   ;;  %s2848_s28 = smov (!%p421_p2), 48  }
   0xd   : > { %s3168_s18 = smov (!%p498_p3, %s2332_s18), 1 }
   0xe   : > { %s2921_s19 = sshll.u32 %s3168_s18, 5  ;;  %s2395_s23 = sshll.u32 %s3168_s18, 4 }
   0xf   : > { %s507_s22 = scalar_lea.vmem %s3155_s2, %s2921_s19  ;;  %s502_s26 = scalar_lea.vmem %s3153_s0, %s2395_s23 }
  0x10   : > { %v551_v0 = vld [vmem:[%s507_s22] sm:$0xff]  ;;  %v552_v1 = vld [vmem:[%s507_s22 + $0x8] sm:$0xff]  ;;  %v553_v2 = vld [vmem:[%s507_s22 + $0x10] sm:$0xff]  ;;  %s510_s29 = scalar_lea.vmem %s3156_s3, %s3168_s18  ;;  %s3039_s13 = scalar_lea.vmem %s3157_s4, %s2921_s19 }
  0x11   : > { %v2626_v3 = vpack.c.bf16 %v552_v1, %v551_v0  ;;  %v554_v4 = vld [vmem:[%s507_s22 + $0x18] sm:$0xff]  ;;  %v2933_v6 = vld [vmem:[%s502_s26] sm:$0xff]  ;;  %v2937_v7 = vld [vmem:[%s502_s26 + $0x8] sm:$0xff]  ;;  %s2843_s22 = smov 80   ;;  %s2846_s26 = smov 72  }
  0x12   : > { %v2630_v5 = vpack.c.bf16 %v554_v4, %v553_v2  ;;  %2490 = vmatprep.mubr.msk.f32.mxu1 %vm562_vm0, %v2933_v6  ;;  %v2352_v8 = vld [vmem:[%s510_s29] ss:$0 sm:$0xff]  ;;  %s2849_s29 = smov 40   ;;  %s2349_s14 = sshll.u32 %s3168_s18, 3 }
  0x13   : > { %2627 = vmatprep.subr.bf16.mxu1 %v2626_v3  ;;  %s523_s12 = scalar_lea.vmem %s3159_s6, %s3168_s18  ;;  %s533_s15 = scalar_lea.vmem %s3161_s8, %s2921_s19 }
  0x14   : > { %2629 = vmatpush3.bf16.msra.mxu1 %v2626_v3 }
  0x15   : > { %2631 = vmatprep.subr.bf16.mxu1 %v2630_v5 }
  0x18   : > { %2633 = vmatpush3.bf16.msra.mxu1 %v2630_v5 }
  0x1b   : > { %2491 = vmatmul.mubr.msk.f32.vlgmr.msra.gmra.mrb[0].mxu1 %vm562_vm0, %v2937_v7 }
  0xee   : > { %v2492_v9 = vpop.f32.mrb[0].mxu1 }
  0xef   : > { %v2945_v10 = vadd.f32 %v2492_v9, %v2352_v8  ;;  %v635_v11 = vpop.f32.mrb[1].mxu1 }
  0xf0   : > { %v2947_v12 = vadd.f32 %v2352_v8, %v635_v11 }
  0xf2   : > { %2497 = vmatprep.mubr.msk.f32.mxu1 %vm654_vm1, %v2947_v12  ;;  %v2953_v13 = vpack.i.bf16 %v2945_v10, %v2947_v12 }
  0xf4   : > { %2748 = vrot.lane.b32.xlu0 %v2953_v13, %s2839_s30 }
 0x166   : > { %v2749_v14 = vpop.permute.xlu0 %2748 }
 0x167   : > { %v2751_v15 = vunpack.i.h.bf16 %v2749_v14  ;;  %v2750_v16 = vunpack.i.l.bf16 %v2749_v14 }
 0x169   : > { %v2634_v18 = vpack.c.bf16 %v2751_v15, %v2750_v16 }
 0x16b   : > { %2636 = vmatprep.subr.msk.bf16.mxu1 %vm2958_vm2, %v2634_v18 }
 0x16c   : > { %2639 = vmatpush3.bf16.xpose.msk.msra.mxu1 %vm2958_vm2, %v2634_v18 }
 0x173   : > { %2498 = vmatmul.mubr.msk.f32.vlgmr.msra.gmra.mrb[2].mxu1 %vm654_vm1, %v2945_v10 }
 0x246   : > { %v2499_v19 = vpop.f32.mrb[2].mxu1 }
 0x247   : > { %v739_v21 = vmul.f32 0.35355338, %v2499_v19  ;;  %v729_v22 = vpop.f32.mrb[3].mxu1 }
 0x248   : > { %v738_v24 = vmul.f32 0.35355338, %v729_v22 }
 0x249   : > { %v741_v25 = vadd.f32 %v739_v21, %v2971_v20 }
 0x24a   : > { %v740_v26 = vadd.f32 %v738_v24, %v2976_v23 }
 0x24b   : > { %v746_v27 = vsel %vm742_vm3, %v741_v25, -inf }
 0x24c   : > { %747 = vmax.xlane.f32.xlu1 %v746_v27  ;;  %v743_v28 = vsel %vm742_vm3, %v740_v26, -inf }
 0x24d   : > { %744 = vmax.xlane.f32.xlu0 %v743_v28 }
 0x25d   : > { %2753 = vrot.lane.b32.xlu1 %v2953_v13, %s2840_s16 }
 0x261   : > { %2758 = vrot.lane.b32.xlu1 %v2953_v13, %s2841_s20  ;;  %s540_s20 = scalar_lea.vmem %s3163_s10, %s2349_s14 }
 0x263   : > { %854 = vrot.lane.b32.xlu0 %v2945_v10, %s2842_s21 }
 0x2d9   : > { %v748_v29 = vpop.xlane.xlu1 %747 }
 0x2da   : > { %v750_v30 = vsub.f32 %v741_v25, %v748_v29  ;;  %v745_v31 = vpop.xlane.xlu0 %744 }
 0x2db   : > { %v749_v32 = vsub.f32 %v740_v26, %v745_v31 }
 0x2dc   : > { %v753_v33 = vmul.f32 1.442695, %v750_v30 }
 0x2dd   : > { %v751_v34 = vmul.f32 1.442695, %v749_v32  ;;  %v2754_v35 = vpop.permute.xlu1 %2753 }
 0x2de   : > { %2787 = vpow2.f32 %v753_v33  ;;  %v2756_v36 = vunpack.i.h.bf16 %v2754_v35  ;;  %v2755_v37 = vunpack.i.l.bf16 %v2754_v35  ;;  %v855_v58 = vpop.permute.xlu0 %854 }
 0x2df   : > { %2789 = vpow2.f32 %v751_v34 }
 0x2e0   : > { %v2640_v38 = vpack.c.bf16 %v2756_v36, %v2755_v37 }
 0x2e1   : > { %v2759_v39 = vpop.permute.xlu1 %2758 }
 0x2e2   : > { %v2761_v40 = vunpack.i.h.bf16 %v2759_v39  ;;  %v2760_v41 = vunpack.i.l.bf16 %v2759_v39  ;;  %2641 = vmatprep.subr.bf16.mxu1 %v2640_v38 }
 0x2e3   : > { %2643 = vmatpush3.bf16.msra.mxu1 %v2640_v38 }
 0x2e4   : > { %v2644_v42 = vpack.c.bf16 %v2761_v40, %v2760_v41 }
 0x2e6   : > { %2646 = vmatprep.subr.msk.bf16.mxu1 %vm2958_vm2, %v2644_v42 }
 0x2e8   : > { %v2788_v43 = vpop.eup %2787 }
 0x2e9   : > { %v758_v44 = vsel %vm742_vm3, %v2788_v43, 0.0  ;;  %v2790_v45 = vpop.eup %2789 }
 0x2ea   : > { %759 = vadd.xlane.f32.xlu1 %v758_v44  ;;  %v755_v46 = vsel %vm742_vm3, %v2790_v45, 0.0 }
 0x2ee   : > { %756 = vadd.xlane.f32.xlu1 %v755_v46 }
 0x2ff   : > { %852 = vrot.lane.b32.xlu1 %v2947_v12, %s2842_s21 }
 0x303   : > { %2763 = vrot.lane.b32.xlu1 %v2953_v13, %s2843_s22 }
 0x307   : > { %1218 = vrot.lane.b32.xlu1 %v2947_v12, %s2844_s24 }
 0x30b   : > { %1220 = vrot.lane.b32.xlu1 %v2945_v10, %s2844_s24  ;;  %s520_s24 = scalar_lea.vmem %s3158_s5, %s2921_s19 }
 0x377   : > { %v760_v47 = vpop.xlane.xlu1 %759 }
 0x378   : > { %2791 = vrcp.f32 %v760_v47 }
 0x37b   : > { %v757_v48 = vpop.xlane.xlu1 %756 }
 0x37c   : > { %2793 = vrcp.f32 %v757_v48 }
 0x37f   : > { %v853_v49 = vpop.permute.xlu1 %852 }
 0x382   : > { %v2792_v51 = vpop.eup %2791 }
 0x383   : > { %v2764_v50 = vpop.permute.xlu1 %2763  ;;  %v764_v56 = vmul.f32 %v2792_v51, %v2788_v43 }
 0x384   : > { %v2766_v53 = vunpack.i.h.bf16 %v2764_v50  ;;  %v2765_v54 = vunpack.i.l.bf16 %v2764_v50 }
 0x386   : > { %v2794_v52 = vpop.eup %2793  ;;  %v2654_v57 = vpack.c.bf16 %v2766_v53, %v2765_v54 }
 0x387   : > { %v763_v55 = vmul.f32 %v2794_v52, %v2790_v45  ;;  %v1219_v59 = vpop.permute.xlu1 %1218 }
 0x389   : > { %2504 = vmatprep.mubr.msk.f32.mxu1 %vm742_vm3, %v763_v55  ;;  %v645_v55 = vld [vmem:[%s3039_s13 + $0x8] sm:$0xff] }
 0x38a   : > { %2505 = vmatmul.mubr.msk.f32.vlgmr.msra.gmra.mrb[4].mxu1 %vm742_vm3, %v764_v56  ;;  %v644_v56 = vld [vmem:[%s3039_s13] sm:$0xff] }
 0x38b   : > { %2649 = vmatpush3.bf16.xpose.msk.msra.mxu1 %vm2958_vm2, %v2644_v42  ;;  %2511 = vmatprep.mubr.msk.f32.mxu1 %vm654_vm1, %v853_v49  ;;  %v1221_v60 = vpop.permute.xlu1 %1220 }
 0x38c   : > { %2656 = vmatprep.subr.msk.bf16.mxu1 %vm2958_vm2, %v2654_v57 }
 0x392   : > { %2512 = vmatmul.mubr.msk.f32.vlgmr.msra.gmra.mrb[6].mxu1 %vm654_vm1, %v855_v58 }
 0x393   : > { %2659 = vmatpush3.bf16.xpose.msk.msra.mxu1 %vm2958_vm2, %v2654_v57  ;;  %2535 = vmatprep.mubr.msk.f32.mxu1 %vm654_vm1, %v1219_v59 }
 0x39a   : > { %2536 = vmatmul.mubr.msk.f32.vlgmr.msra.gmra.mrb[8].mxu1 %vm654_vm1, %v1221_v60 }
 0x45d   : > { %v3005_v61 = vpop.f32.mrb[4].mxu1 }
 0x45e   : > { %v3007_v62 = vpop.f32.mrb[5].mxu1 }
 0x465   : > { %v2513_v63 = vpop.f32.mrb[6].mxu1 }
 0x466   : > { %v944_v0 = vmul.f32 0.35355338, %v2513_v63  ;;  %v934_v1 = vpop.f32.mrb[7].mxu1 }
 0x467   : > { %v943_v2 = vmul.f32 0.35355338, %v934_v1 }
 0x468   : > { %v946_v3 = vadd.f32 %v944_v0, %v2971_v20 }
 0x469   : > { %v945_v4 = vadd.f32 %v943_v2, %v2976_v23 }
 0x46a   : > { %v950_v5 = vsel %vm742_vm3, %v946_v3, -inf }
 0x46b   : > { %951 = vmax.xlane.f32.xlu0 %v950_v5  ;;  %v947_v8 = vsel %vm742_vm3, %v945_v4, -inf }
 0x46c   : > { %948 = vmax.xlane.f32.xlu1 %v947_v8 }
 0x46d   : > { %v2537_v9 = vpop.f32.mrb[8].mxu1 }
 0x46e   : > { %v1300_v11 = vpop.f32.mrb[9].mxu1  ;;  %v1310_v30 = vmul.f32 0.35355338, %v2537_v9 }
 0x46f   : > { %v1309_v27 = vmul.f32 0.35355338, %v1300_v11 }
 0x470   : > { %v1312_v31 = vadd.f32 %v1310_v30, %v2971_v20 }
 0x471   : > { %v1311_v28 = vadd.f32 %v1309_v27, %v2976_v23 }
 0x472   : > { %v1316_v32 = vsel %vm742_vm3, %v1312_v31, -inf }
 0x473   : > { %v1313_v29 = vsel %vm742_vm3, %v1311_v28, -inf }
 0x4f8   : > { %v952_v14 = vpop.xlane.xlu0 %951 }
 0x4f9   : > { %v954_v15 = vsub.f32 %v946_v3, %v952_v14  ;;  %v949_v16 = vpop.xlane.xlu1 %948 }
 0x4fa   : > { %v953_v18 = vsub.f32 %v945_v4, %v949_v16 }
 0x4fb   : > { %v957_v19 = vmul.f32 1.442695, %v954_v15 }
 0x4fc   : > { %v955_v21 = vmul.f32 1.442695, %v953_v18 }
 0x4fd   : > { %2795 = vpow2.f32 %v957_v19  ;;  %v646_v19 = vld [vmem:[%s3039_s13 + $0x10] sm:$0xff] }
 0x4fe   : > { %2797 = vpow2.f32 %v955_v21 }
 0x507   : > { %v2796_v22 = vpop.eup %2795 }
 0x508   : > { %v2798_v24 = vpop.eup %2797  ;;  %v962_v25 = vsel %vm742_vm3, %v2796_v22, 0.0 }
 0x509   : > { %963 = vadd.xlane.f32.xlu0 %v962_v25  ;;  %v959_v26 = vsel %vm742_vm3, %v2798_v24, 0.0 }
 0x50a   : > { %960 = vadd.xlane.f32.xlu1 %v959_v26 }
 0x51b   : > { %2768 = vrot.lane.b32.xlu1 %v2953_v13, %s2845_s25  ;;  %s2399_s25 = sshll.u32 %s3168_s18, 7 }
 0x51f   : > { %2773 = vrot.lane.b32.xlu0 %v2953_v13, %s2846_s26  ;;  %1505 = vrot.lane.b32.xlu1 %v2947_v12, %s2847_s27 }
 0x523   : > { %1507 = vrot.lane.b32.xlu1 %v2945_v10, %s2847_s27 }
 0x53e   : > { %1314 = vmax.xlane.f32.xlu0 %v1313_v29 }
 0x547   : > { %1317 = vmax.xlane.f32.xlu1 %v1316_v32 }
 0x558   : > { %2778 = vrot.lane.b32.xlu1 %v2953_v13, %s2848_s28  ;;  %s3101_s28 = scalar_lea.vmem %s3160_s7, %s2399_s25 }
 0x55c   : > { %2783 = vrot.lane.b32.xlu1 %v2953_v13, %s2849_s29 }
 0x596   : > { %v964_v12 = vpop.xlane.xlu0 %963 }
 0x597   : > { %2799 = vrcp.f32 %v964_v12  ;;  %v961_v10 = vpop.xlane.xlu1 %960 }
 0x598   : > { %2801 = vrcp.f32 %v961_v10 }
 0x59a   : > { %v2774_v33 = vpop.permute.xlu0 %2773 }
 0x59b   : > { %v2776_v34 = vunpack.i.h.bf16 %v2774_v33  ;;  %v2775_v35 = vunpack.i.l.bf16 %v2774_v33  ;;  %v2769_v36 = vpop.permute.xlu1 %2768 }
 0x59c   : > { %v2771_v37 = vunpack.i.h.bf16 %v2769_v36  ;;  %v2770_v38 = vunpack.i.l.bf16 %v2769_v36 }
 0x59d   : > { %v2664_v39 = vpack.c.bf16 %v2776_v34, %v2775_v35  ;;  %v647_v34 = vld [vmem:[%s3039_s13 + $0x18] sm:$0xff] }
 0x59e   : > { %v2650_v40 = vpack.c.bf16 %v2771_v37, %v2770_v38 }
 0x59f   : > { %2666 = vmatprep.subr.msk.bf16.mxu1 %vm2958_vm2, %v2664_v39  ;;  %v1506_v41 = vpop.permute.xlu1 %1505 }
 0x5a0   : > { %2651 = vmatprep.subr.bf16.mxu0 %v2650_v40  ;;  %2669 = vmatpush3.bf16.xpose.msk.msra.mxu1 %vm2958_vm2, %v2664_v39 }
 0x5a1   : > { %v2800_v13 = vpop.eup %2799  ;;  %2554 = vmatprep.mubr.msk.f32.mxu1 %vm654_vm1, %v1506_v41  ;;  %2653 = vmatpush3.bf16.msra.mxu0 %v2650_v40 }
 0x5a2   : > { %v2802_v42 = vpop.eup %2801  ;;  %v968_v44 = vmul.f32 %v2800_v13, %v2796_v22  ;;  %2521 = vmatprep.subr.mxu0 %v645_v55 }
 0x5a3   : > { %v967_v43 = vmul.f32 %v2802_v42, %v2798_v24  ;;  %v1508_v45 = vpop.permute.xlu1 %1507  ;;  %v1794_v42 = vlaneseq }
 0x5a5   : > { %2518 = vmatprep.mubr.msk.f32.mxu0 %vm742_vm3, %v967_v43  ;;  %v3066_v43 = vshrl.u32 %v1794_v42, 7 }
 0x5a6   : > { %2519 = vmatmul.mubr.msk.f32.vlgmr.msra.gmra.mrb[0].mxu0 %vm742_vm3, %v968_v44 }
 0x5a7   : > { %2555 = vmatmul.mubr.msk.f32.vlgmr.msra.gmra.mrb[10].mxu1 %vm654_vm1, %v1508_v45  ;;  %2522 = vmatpush3.msra.mxu0 %v645_v55  ;;  %v1796_v44 = vsub.s32 0, %v3066_v43  ;;  %v3072_v45 = vld [vmem:[%s540_s20] sm:$0x3f]  ;;  %s536_s20 = scalar_lea.vmem %s3162_s9, %s3168_s18 }
 0x5a8   : > { %2526 = vmatprep.subr.mxu0 %v644_v56 }
 0x5cb   : > { %v1315_v46 = vpop.xlane.xlu0 %1314 }
 0x5cc   : > { %v1319_v47 = vsub.f32 %v1311_v28, %v1315_v46  ;;  %v1797_v46 = vrot.slane %v3072_v45, %v1796_v44  ;;  %v1961_v44 = vld [vmem:[%s3101_s28 + $0x60] sm:$0xff] }
 0x5ce   : > { %v1321_v48 = vmul.f32 1.442695, %v1319_v47 }
 0x5d0   : > { %2803 = vpow2.f32 %v1321_v48 }
 0x5d4   : > { %v1318_v17 = vpop.xlane.xlu1 %1317 }
 0x5d5   : > { %v1320_v49 = vsub.f32 %v1312_v31, %v1318_v17 }
 0x5d7   : > { %v1323_v50 = vmul.f32 1.442695, %v1320_v49 }
 0x5d8   : > { %v2779_v58 = vpop.permute.xlu1 %2778 }
 0x5d9   : > { %2805 = vpow2.f32 %v1323_v50  ;;  %v2781_v60 = vunpack.i.h.bf16 %v2779_v58  ;;  %v2780_v63 = vunpack.i.l.bf16 %v2779_v58 }
 0x5da   : > { %v2804_v51 = vpop.eup %2803 }
 0x5db   : > { %v1325_v52 = vsel %vm742_vm3, %v2804_v51, 0.0  ;;  %v2660_v4 = vpack.c.bf16 %v2781_v60, %v2780_v63 }
 0x5dc   : > { %1326 = vadd.xlane.f32.xlu0 %v1325_v52  ;;  %v2784_v16 = vpop.permute.xlu1 %2783 }
 0x5dd   : > { %v2786_v21 = vunpack.i.h.bf16 %v2784_v16  ;;  %v2785_v22 = vunpack.i.l.bf16 %v2784_v16 }
 0x5e3   : > { %v2806_v53 = vpop.eup %2805 }
 0x5e4   : > { %v1328_v54 = vsel %vm742_vm3, %v2806_v53, 0.0 }
 0x5e5   : > { %1329 = vadd.xlane.f32.xlu0 %v1328_v54 }
 0x669   : > { %v1327_v57 = vpop.xlane.xlu0 %1326 }
 0x66a   : > { %2807 = vrcp.f32 %v1327_v57 }
 0x672   : > { %v1330_v59 = vpop.xlane.xlu0 %1329 }
 0x673   : > { %2809 = vrcp.f32 %v1330_v59 }
 0x674   : > { %v2808_v15 = vpop.eup %2807 }
 0x679   : > { %v2520_v0 = vpop.f32.mrb[0].mxu0 }
 0x67a   : > { %v1047_v1 = vpop.f32.mrb[1].mxu0  ;;  %v2556_v2 = vpop.f32.mrb[10].mxu1 }
 0x67b   : > { %2523 = vmatprep.mubr.msk.f32.mxu0 %vm654_vm1, %v1047_v1  ;;  %v1587_v3 = vpop.f32.mrb[11].mxu1  ;;  %v1597_v5 = vmul.f32 0.35355338, %v2556_v2  ;;  %v1840_v1 = vld [vmem:[%s520_s24 + $0x8] sm:$0xff] }
 0x67c   : > { %v1596_v8 = vmul.f32 0.35355338, %v1587_v3  ;;  %2524 = vmatmul.mubr.msk.f32.vlgmr.msra.gmra.mrb[2].mxu0 %vm654_vm1, %v2520_v0  ;;  %v1839_v0 = vld [vmem:[%s520_s24] sm:$0xff]  ;;  %v1841_v3 = vld [vmem:[%s520_s24 + $0x10] sm:$0xff] }
 0x67d   : > { %2527 = vmatpush3.msra.mxu0 %v644_v56  ;;  %2528 = vmatprep.mubr.msk.f32.mxu0 %vm654_vm1, %v3007_v62  ;;  %v1599_v14 = vadd.f32 %v1597_v5, %v2971_v20  ;;  %v2810_v18 = vpop.eup %2809  ;;  %v1333_v62 = vmul.f32 %v2808_v15, %v2804_v51  ;;  %v2670_v20 = vpack.c.bf16 %v2786_v21, %v2785_v22 }
 0x67e   : > { %2661 = vmatprep.subr.bf16.mxu0 %v2660_v4  ;;  %v1598_v9 = vadd.f32 %v1596_v8, %v2976_v23  ;;  %v1334_v23 = vmul.f32 %v2810_v18, %v2806_v53  ;;  %v2674_v2 = vpack.c.bf16 %v1840_v1, %v1839_v0  ;;  %v1829_v18 = vsub.s32 2, %v3066_v43 }
 0x67f   : > { %v1603_v24 = vsel %vm742_vm3, %v1599_v14, -inf }
 0x680   : > { %v1600_v11 = vsel %vm742_vm3, %v1598_v9, -inf  ;;  %2675 = vmatprep.subr.bf16.mxu1 %v2674_v2  ;;  %v1830_v21 = vrot.slane %v3072_v45, %v1829_v18 }
 0x681   : > { %1601 = vmax.xlane.f32.xlu0 %v1600_v11  ;;  %2677 = vmatpush3.bf16.msra.mxu1 %v2674_v2 }
 0x684   : > { %2529 = vmatmul.mubr.msk.f32.vlgmr.msra.gmra.mrb[2].mxu0 %vm654_vm1, %v3005_v61 }
 0x685   : > { %2663 = vmatpush3.bf16.msra.mxu0 %v2660_v4  ;;  %1604 = vmax.xlane.f32.xlu0 %v1603_v24  ;;  %v1842_v4 = vld [vmem:[%s520_s24 + $0x18] sm:$0xff]  ;;  %s545_s24 = scalar_lea.vmem %s3164_s11, %s2395_s23 }
 0x686   : > { %2542 = vmatprep.mubr.msk.f32.mxu0 %vm742_vm3, %v1333_v62  ;;  %2545 = vmatprep.subr.mxu0 %v646_v19  ;;  %v2678_v5 = vpack.c.bf16 %v1842_v4, %v1841_v3 }
 0x688   : > { %2543 = vmatmul.mubr.msk.f32.vlgmr.msra.gmra.mrb[4].mxu0 %vm742_vm3, %v1334_v23  ;;  %2679 = vmatprep.subr.bf16.mxu1 %v2678_v5 }
 0x689   : > { %2546 = vmatpush3.msra.mxu0 %v646_v19  ;;  %2681 = vmatpush3.bf16.msra.mxu1 %v2678_v5  ;;  %v1835_v19 = vsub.s32 3, %v3066_v43 }
 0x68a   : > { %2671 = vmatprep.subr.bf16.mxu0 %v2670_v20 }
 0x68b   : > { %v1836_v62 = vrot.slane %v3072_v45, %v1835_v19 }
 0x70e   : > { %v1602_v25 = vpop.xlane.xlu0 %1601 }
 0x70f   : > { %v1606_v26 = vsub.f32 %v1598_v9, %v1602_v25 }
 0x711   : > { %v1608_v27 = vmul.f32 1.442695, %v1606_v26 }
 0x712   : > { %v1605_v28 = vpop.xlane.xlu0 %1604 }
 0x713   : > { %2811 = vpow2.f32 %v1608_v27  ;;  %v1607_v61 = vsub.f32 %v1599_v14, %v1605_v28 }
 0x715   : > { %v1610_v29 = vmul.f32 1.442695, %v1607_v61  ;;  %v1949_v61 = vld [vmem:[%s3101_s28] sm:$0xff] }
 0x717   : > { %2813 = vpow2.f32 %v1610_v29  ;;  %v1950_v29 = vld [vmem:[%s3101_s28 + $0x8] sm:$0xff] }
 0x71d   : > { %v2812_v30 = vpop.eup %2811 }
 0x71e   : > { %v1612_v31 = vsel %vm742_vm3, %v2812_v30, 0.0 }
 0x71f   : > { %1613 = vadd.xlane.f32.xlu0 %v1612_v31  ;;  %v1951_v31 = vld [vmem:[%s3101_s28 + $0x10] sm:$0xff] }
 0x721   : > { %v2814_v32 = vpop.eup %2813 }
 0x722   : > { %v1615_v12 = vsel %vm742_vm3, %v2814_v32, 0.0 }
 0x723   : > { %1616 = vadd.xlane.f32.xlu0 %v1615_v12 }
 0x75b   : > { %v2544_v10 = vpop.f32.mrb[4].mxu0 }
 0x75c   : > { %v1413_v33 = vpop.f32.mrb[5].mxu0 }
 0x75d   : > { %2547 = vmatprep.mubr.msk.f32.mxu0 %vm654_vm1, %v1413_v33  ;;  %v1954_v33 = vld [vmem:[%s3101_s28 + $0x28] sm:$0xff] }
 0x75e   : > { %2548 = vmatmul.mubr.msk.f32.vlgmr.msra.gmra.mrb[2].mxu0 %vm654_vm1, %v2544_v10  ;;  %v1953_v10 = vld [vmem:[%s3101_s28 + $0x20] sm:$0xff] }
 0x75f   : > { %2673 = vmatpush3.bf16.msra.mxu0 %v2670_v20 }
 0x760   : > { %2564 = vmatprep.subr.mxu0 %v647_v34 }
 0x7ac   : > { %v1614_v35 = vpop.xlane.xlu0 %1613 }
 0x7ad   : > { %2815 = vrcp.f32 %v1614_v35  ;;  %v1955_v35 = vld [vmem:[%s3101_s28 + $0x30] sm:$0xff] }
 0x7b0   : > { %v1617_v36 = vpop.xlane.xlu0 %1616 }
 0x7b1   : > { %2817 = vrcp.f32 %v1617_v36  ;;  %v1956_v36 = vld [vmem:[%s3101_s28 + $0x38] sm:$0xff] }
 0x7b7   : > { %v2816_v37 = vpop.eup %2815 }
 0x7b8   : > { %v1620_v38 = vmul.f32 %v2816_v37, %v2812_v30  ;;  %v2682_v30 = vpack.c.bf16 %v1950_v29, %v1949_v61  ;;  %v2694_v37 = vpack.c.bf16 %v1956_v36, %v1955_v35  ;;  %v2087_v35 = vld [vmem:[%s533_s15 + $0x18] sm:$0xff] }
 0x7ba   : > { %2561 = vmatprep.mubr.msk.f32.mxu0 %vm742_vm3, %v1620_v38  ;;  %v1957_v38 = vld [vmem:[%s3101_s28 + $0x40] sm:$0xff] }
 0x7bb   : > { %v2818_v39 = vpop.eup %2817 }
 0x7bc   : > { %v1621_v40 = vmul.f32 %v2818_v39, %v2814_v32  ;;  %v1952_v32 = vld [vmem:[%s3101_s28 + $0x18] sm:$0xff]  ;;  %v1958_v39 = vld [vmem:[%s3101_s28 + $0x48] sm:$0xff] }
 0x7bd   : > { %v2686_v12 = vpack.c.bf16 %v1952_v32, %v1951_v31 }
 0x7be   : > { %2562 = vmatmul.mubr.msk.f32.vlgmr.msra.gmra.mrb[6].mxu0 %vm742_vm3, %v1621_v40  ;;  %v1959_v40 = vld [vmem:[%s3101_s28 + $0x50] sm:$0xff] }
 0x7bf   : > { %2565 = vmatpush3.msra.mxu0 %v647_v34  ;;  %v2690_v34 = vpack.c.bf16 %v1954_v33, %v1953_v10  ;;  %v2085_v10 = vld [vmem:[%s533_s15 + $0x8] sm:$0xff] }
 0x7c0   : > { %2683 = vmatprep.subr.bf16.mxu0 %v2682_v30 }
 0x891   : > { %v2563_v41 = vpop.f32.mrb[6].mxu0 }
 0x892   : > { %v1700_v13 = vpop.f32.mrb[7].mxu0 }
 0x893   : > { %2566 = vmatprep.mubr.msk.f32.mxu0 %vm654_vm1, %v1700_v13  ;;  %v1960_v13 = vld [vmem:[%s3101_s28 + $0x58] sm:$0xff] }
 0x894   : > { %2567 = vmatmul.mubr.msk.f32.vlgmr.msra.gmra.mrb[2].mxu0 %vm654_vm1, %v2563_v41  ;;  %v2698_v41 = vpack.c.bf16 %v1958_v39, %v1957_v38  ;;  %v2702_v42 = vpack.c.bf16 %v1960_v13, %v1959_v40 }
 0x895   : > { %2685 = vmatpush3.bf16.msra.mxu0 %v2682_v30 }
 0x896   : > { %2687 = vmatprep.subr.bf16.mxu0 %v2686_v12 }
 0x899   : > { %2689 = vmatpush3.bf16.msra.mxu0 %v2686_v12 }
 0x89a   : > { %2691 = vmatprep.subr.bf16.mxu0 %v2690_v34 }
 0x89d   : > { %2693 = vmatpush3.bf16.msra.mxu0 %v2690_v34  ;;  %v2086_v34 = vld [vmem:[%s533_s15 + $0x10] sm:$0xff] }
 0x89e   : > { %2695 = vmatprep.subr.bf16.mxu0 %v2694_v37  ;;  %v2718_v36 = vpack.c.bf16 %v2087_v35, %v2086_v34 }
 0x8a1   : > { %2697 = vmatpush3.bf16.msra.mxu0 %v2694_v37 }
 0x8a2   : > { %2699 = vmatprep.subr.bf16.mxu0 %v2698_v41 }
 0x8a5   : > { %2701 = vmatpush3.bf16.msra.mxu0 %v2698_v41 }
 0x8a6   : > { %2703 = vmatprep.subr.bf16.mxu0 %v2702_v42 }
 0x8a9   : > { %2705 = vmatpush3.bf16.msra.mxu0 %v2702_v42  ;;  %v2074_v42 = vsub.s32 4, %v3066_v43 }
 0x967   : > { %v2568_v47 = vpop.f32.mrb[2].mxu0 }
 0x968   : > { %v1793_v48 = vadd.f32 %v2568_v47, %v2937_v7  ;;  %v1781_v17 = vpop.f32.mrb[3].mxu0 }
 0x969   : > { %v1792_v49 = vadd.f32 %v1781_v17, %v2933_v6  ;;  %v1964_v17 = vld [vmem:[%s3101_s28 + $0x78] sm:$0xff] }
 0x96a   : > { %v1799_v50 = vadd.f32 %v1797_v46, %v1793_v48  ;;  %v1963_v48 = vld [vmem:[%s3101_s28 + $0x70] sm:$0xff] }
 0x96b   : > { %v1798_v51 = vadd.f32 %v1797_v46, %v1792_v49  ;;  %v1962_v46 = vld [vmem:[%s3101_s28 + $0x68] sm:$0xff]  ;;  %v2710_v49 = vpack.c.bf16 %v1964_v17, %v1963_v48 }
 0x96c   : > { %v1803_v52 = vsel %vm562_vm0, %v1799_v50, 0.0  ;;  %v2706_v47 = vpack.c.bf16 %v1962_v46, %v1961_v44  ;;  %v2080_v44 = vsub.s32 5, %v3066_v43  ;;  %v2075_v46 = vrot.slane %v3072_v45, %v2074_v42 }
 0x96d   : > { %1804 = vadd.xlane.f32.xlu1 %v1803_v52  ;;  %v1800_v53 = vsel %vm562_vm0, %v1798_v51, 0.0 }
 0x96e   : > { %1801 = vadd.xlane.f32.xlu0 %v1800_v53  ;;  %2707 = vmatprep.subr.bf16.mxu0 %v2706_v47  ;;  %v2081_v17 = vrot.slane %v3072_v45, %v2080_v44 }
 0x96f   : > { %2709 = vmatpush3.bf16.msra.mxu0 %v2706_v47 }
 0x970   : > { %2711 = vmatprep.subr.bf16.mxu0 %v2710_v49 }
 0x973   : > { %2713 = vmatpush3.bf16.msra.mxu0 %v2710_v49 }
 0x9fa   : > { %v1805_v54 = vpop.xlane.xlu1 %1804 }
 0x9fb   : > { %v1808_v55 = vmul.f32 0.03125, %v1805_v54  ;;  %v1802_v56 = vpop.xlane.xlu0 %1801 }
 0x9fc   : > { %v1807_v57 = vmul.f32 0.03125, %v1802_v56 }
 0x9fd   : > { %v1810_v58 = vsub.f32 %v1799_v50, %v1808_v55  ;;  %v2387_v50 = vld [vmem:[%s523_s12] ss:$0 sm:$0xff] }
 0x9fe   : > { %v1809_v59 = vsub.f32 %v1798_v51, %v1807_v57 }
 0x9ff   : > { %v1812_v63 = vmul.f32 %v1810_v58, %v1810_v58 }
 0xa00   : > { %v1811_v60 = vmul.f32 %v1809_v59, %v1809_v59 }
 0xa01   : > { %v1816_v6 = vsel %vm562_vm0, %v1812_v63, 0.0 }
 0xa02   : > { %v1813_v7 = vsel %vm562_vm0, %v1811_v60, 0.0 }
 0xa03   : > { %1814 = vadd.xlane.f32.xlu0 %v1813_v7 }
 0xa07   : > { %1817 = vadd.xlane.f32.xlu0 %v1816_v6 }
 0xa90   : > { %v1815_v8 = vpop.xlane.xlu0 %1814 }
 0xa91   : > { %v1819_v9 = vmul.f32 0.03125, %v1815_v8 }
 0xa93   : > { %v1821_v11 = vadd.f32 1e-12, %v1819_v9 }
 0xa94   : > { %v1818_v14 = vpop.xlane.xlu0 %1817 }
 0xa95   : > { %2819 = vrsqrt.f32 %v1821_v11  ;;  %v1820_v15 = vmul.f32 0.03125, %v1818_v14  ;;  %v1967_v14 = vsub.s32 1, %v3066_v43  ;;  %v2390_v43 = vld [vmem:[%s536_s20] ss:$0 sm:$0xff] }
 0xa97   : > { %v1822_v16 = vadd.f32 1e-12, %v1820_v15  ;;  %v1968_v15 = vrot.slane %v3072_v45, %v1967_v14 }
 0xa99   : > { %2821 = vrsqrt.f32 %v1822_v16 }
 0xa9f   : > { %v2820_v22 = vpop.eup %2819 }
 0xaa0   : > { %v1825_v24 = vmul.f32 %v2820_v22, %v1809_v59 }
 0xaa2   : > { %v1831_v23 = vmul.f32 %v1830_v21, %v1825_v24 }
 0xaa3   : > { %v2822_v20 = vpop.eup %2821 }
 0xaa4   : > { %v1826_v25 = vmul.f32 %v2822_v20, %v1810_v58  ;;  %v3089_v26 = vadd.f32 %v1836_v62, %v1831_v23 }
 0xaa6   : > { %v1832_v27 = vmul.f32 %v1830_v21, %v1826_v25  ;;  %2577 = vmatprep.mubr.msk.f32.mxu1 %vm562_vm0, %v3089_v26 }
 0xaa8   : > { %v3093_v28 = vadd.f32 %v1836_v62, %v1832_v27 }
 0xaaa   : > { %2578 = vmatmul.mubr.msk.f32.vlgmr.msra.gmra.mrb[12].mxu1 %vm562_vm0, %v3093_v28 }
 0xb7d   : > { %v2579_v51 = vpop.f32.mrb[12].mxu1 }
 0xb7e   : > { %v1928_v52 = vadd.f32 %v2579_v51, %v2387_v50  ;;  %v1922_v53 = vpop.f32.mrb[13].mxu1 }
 0xb7f   : > { %v1923_v54 = vadd.f32 %v2387_v50, %v1922_v53 }
 0xb80   : > { %v1932_v55 = vmul.f32 %v1928_v52, %v1928_v52 }
 0xb81   : > { %v1931_v56 = vmul.f32 %v1923_v54, %v1923_v54 }
 0xb82   : > { %v1934_v57 = vmul.f32 %v1932_v55, %v1928_v52 }
 0xb83   : > { %v1933_v58 = vmul.f32 %v1931_v56, %v1923_v54 }
 0xb84   : > { %v1936_v59 = vmul.f32 0.044715, %v1934_v57 }
 0xb85   : > { %v1935_v60 = vmul.f32 0.044715, %v1933_v58 }
 0xb86   : > { %v1938_v7 = vadd.f32 %v1936_v59, %v1928_v52 }
 0xb87   : > { %v1937_v63 = vadd.f32 %v1935_v60, %v1923_v54 }
 0xb88   : > { %v1940_v6 = vmul.f32 0.7978846, %v1938_v7 }
 0xb89   : > { %v1939_v0 = vmul.f32 0.7978846, %v1937_v63 }
 0xb8a   : > { %2823 = vtanh.f32 %v1940_v6 }
 0xb8b   : > { %2825 = vtanh.f32 %v1939_v0 }
 0xb94   : > { %v2824_v1 = vpop.eup %2823 }
 0xb95   : > { %v2826_v2 = vpop.eup %2825  ;;  %v1944_v3 = vadd.f32 1.0, %v2824_v1 }
 0xb96   : > { %v1943_v4 = vadd.f32 1.0, %v2826_v2 }
 0xb97   : > { %v1946_v5 = vmul.f32 0.5, %v1944_v3 }
 0xb98   : > { %v1945_v8 = vmul.f32 0.5, %v1943_v4 }
 0xb99   : > { %v1948_v11 = vmul.f32 %v1946_v5, %v1928_v52 }
 0xb9a   : > { %v1947_v9 = vmul.f32 %v1945_v8, %v1923_v54 }
 0xb9c   : > { %2612 = vmatprep.mubr.f32.mxu0 %v1947_v9 }
 0xb9d   : > { %2613 = vmatmul.mubr.f32.vlgmr.msra.gmra.mrb[8].mxu0 %v1948_v11 }
 0xc70   : > { %v2614_v16 = vpop.f32.mrb[8].mxu0 }
 0xc71   : > { %v2035_v18 = vpop.f32.mrb[9].mxu0  ;;  %v2041_v19 = vadd.f32 %v2614_v16, %v1968_v15 }
 0xc72   : > { %v2036_v21 = vadd.f32 %v2035_v18, %v1968_v15 }
 0xc73   : > { %v2045_v62 = vadd.f32 %v2041_v19, %v3093_v28  ;;  %v2084_v28 = vld [vmem:[%s533_s15] sm:$0xff] }
 0xc74   : > { %v2044_v22 = vadd.f32 %v2036_v21, %v3089_v26  ;;  %v2714_v33 = vpack.c.bf16 %v2085_v10, %v2084_v28 }
 0xc75   : > { %v2049_v23 = vsel %vm562_vm0, %v2045_v62, 0.0 }
 0xc76   : > { %v2046_v24 = vsel %vm562_vm0, %v2044_v22, 0.0  ;;  %2715 = vmatprep.subr.bf16.mxu1 %v2714_v33 }
 0xc77   : > { %2047 = vadd.xlane.f32.xlu0 %v2046_v24  ;;  %2717 = vmatpush3.bf16.msra.mxu1 %v2714_v33 }
 0xc78   : > { %2719 = vmatprep.subr.bf16.mxu1 %v2718_v36 }
 0xc7b   : > { %2050 = vadd.xlane.f32.xlu0 %v2049_v23  ;;  %2721 = vmatpush3.bf16.msra.mxu1 %v2718_v36 }
 0xd04   : > { %v2048_v20 = vpop.xlane.xlu0 %2047 }
 0xd05   : > { %v2052_v25 = vmul.f32 0.03125, %v2048_v20 }
 0xd07   : > { %v2054_v27 = vsub.f32 %v2044_v22, %v2052_v25 }
 0xd08   : > { %v2051_v61 = vpop.xlane.xlu0 %2050 }
 0xd09   : > { %v2053_v29 = vmul.f32 0.03125, %v2051_v61  ;;  %v2056_v30 = vmul.f32 %v2054_v27, %v2054_v27 }
 0xd0b   : > { %v2055_v31 = vsub.f32 %v2045_v62, %v2053_v29  ;;  %v2058_v32 = vsel %vm562_vm0, %v2056_v30, 0.0 }
 0xd0c   : > { %2059 = vadd.xlane.f32.xlu0 %v2058_v32 }
 0xd0d   : > { %v2057_v26 = vmul.f32 %v2055_v31, %v2055_v31 }
 0xd0f   : > { %v2061_v12 = vsel %vm562_vm0, %v2057_v26, 0.0 }
 0xd10   : > { %2062 = vadd.xlane.f32.xlu0 %v2061_v12 }
 0xd99   : > { %v2060_v37 = vpop.xlane.xlu0 %2059 }
 0xd9a   : > { %v2064_v38 = vmul.f32 0.03125, %v2060_v37 }
 0xd9c   : > { %v2066_v39 = vadd.f32 1e-12, %v2064_v38 }
 0xd9d   : > { %v2063_v40 = vpop.xlane.xlu0 %2062 }
 0xd9e   : > { %2827 = vrsqrt.f32 %v2066_v39  ;;  %v2065_v41 = vmul.f32 0.03125, %v2063_v40 }
 0xda0   : > { %v2067_v13 = vadd.f32 1e-12, %v2065_v41 }
 0xda2   : > { %2829 = vrsqrt.f32 %v2067_v13 }
 0xda8   : > { %v2828_v47 = vpop.eup %2827 }
 0xda9   : > { %v2070_v48 = vmul.f32 %v2828_v47, %v2054_v27 }
 0xdab   : > { %v2076_v49 = vmul.f32 %v2075_v46, %v2070_v48 }
 0xdac   : > { %v2830_v50 = vpop.eup %2829 }
 0xdad   : > { %v2071_v51 = vmul.f32 %v2830_v50, %v2055_v31  ;;  %v2082_v52 = vadd.f32 %v2081_v17, %v2076_v49 }
 0xdaf   : > { %v2077_v53 = vmul.f32 %v2075_v46, %v2071_v51  ;;  %2623 = vmatprep.mubr.msk.f32.mxu1 %vm562_vm0, %v2082_v52 }
 0xdb1   : > { %v2083_v54 = vadd.f32 %v2081_v17, %v2077_v53 }
 0xdb3   : > { %2624 = vmatmul.mubr.msk.f32.vlgmr.msra.gmra.mrb[14].mxu1 %vm562_vm0, %v2083_v54 }
 0xe86   : > { %v2625_v45 = vpop.f32.mrb[14].mxu1 }
 0xe87   : > { %v2173_v55 = vadd.f32 %v2625_v45, %v2390_v43  ;;  %v2167_v56 = vpop.f32.mrb[15].mxu1 }
 0xe88   : > { %v2168_v57 = vadd.f32 %v2390_v43, %v2167_v56 }
 0xe89   : > { %2177 = vst [vmem:[%s545_s24 + $0x8] sm:$0xff] %v2173_v55 }
 0xe8a   : > { %2176 = vst [vmem:[%s545_s24] sm:$0xff] %v2168_v57 }
 0xe8b PF: > { %s21_s17 = sadd.s32 1, %s2837_s17  }
 0xe8c   : > { %p18_p4 = scmp.ge.s32.totalorder %s21_s17, 4  }
 0xe8e   :  { %20 = sbr.rel (!%p18_p4) target bundleno = 1 (0x1), region = 121 }

</bundles_post_ra>
